<compile_context>
chip_gen: v5e
topology: v5e:2x2
jax: 0.10.0
libtpu: 0.0.40
codegen_flags: <defaults>
</compile_context>

<pallas_src>
import jax
import jax.numpy as jnp
from jax.experimental import pallas as pl
from jax.experimental.pallas import tpu as pltpu


def channel_attention_kernel(x_ref, w1_ref, w2_ref, cparams_ref, o_ref):
    # ---- SMEM scalar reads first (cheap; keep them off the tail of the kernel)
    w1c = cparams_ref[0]
    b1c = cparams_ref[1]
    w2c = cparams_ref[2]
    b2c = cparams_ref[3]

    x = x_ref[...].astype(jnp.float32)                    # (Bt, N, C), C on lanes

    # ---- GAP over sequence axis N (AdaptiveAvgPool1d(1)): sublane reduction
    avg = jnp.mean(x, axis=1)                             # (Bt, C)

    # ---- FC branch, batched over the Bt rows of this tile:
    #      fc = sigmoid(relu(avg @ W1^T) @ W2^T)          -> (Bt, C)
    h = jax.lax.dot_general(avg, w1_ref[...], (((1,), (1,)), ((), ())),
                            preferred_element_type=jnp.float32)       # (Bt, H)
    h = jnp.maximum(h, 0.0)
    fc = jax.nn.sigmoid(
        jax.lax.dot_general(h, w2_ref[...], (((1,), (1,)), ((), ())),
                            preferred_element_type=jnp.float32))      # (Bt, C)

    # ---- conv branch: two Conv1d(1,1,k=1) = scalar affine chain, elementwise
    conv = jax.nn.sigmoid(w2c * jnp.maximum(w1c * x + b1c, 0.0) + b2c)  # (Bt, N, C)

    # ---- out[b, c, n] = fc[b, c] * conv[b, n, c]
    # Multiply in the lane-dense (N, C) layout, then one in-register transpose
    # (XLU) to the required (C, N) output layout -- no extra HBM pass.
    out_nc = fc[:, None, :] * conv                                      # (Bt, N, C)
    o_ref[...] = jnp.transpose(out_nc, (0, 2, 1)).astype(o_ref.dtype)   # (Bt, C, N)


def channel_attention(x, w_fc1, w_fc2, conv_params, *, target_tile_bytes=2 << 20):
    """x: (B, N, C) float32.  Returns (B, C, N) float32 (matches the PyTorch module)."""
    B, N, C = x.shape
    H = w_fc1.shape[0]

    # Pack as many batch rows per grid step as fit ~target_tile_bytes of
    # (input + output) data.  For the tiny demo this collapses the grid to one
    # step; for realistic B it yields ~MiB-scale, pipeline-friendly tiles that
    # stay within the default scoped-VMEM limit on v5e/v6e/v7x even with
    # double buffering.
    bytes_per_row = 2 * N * C * x.dtype.itemsize
    bt = int(max(1, min(B, target_tile_bytes // max(1, bytes_per_row))))
    grid = (pl.cdiv(B, bt),)

    return pl.pallas_call(
        channel_attention_kernel,
        out_shape=jax.ShapeDtypeStruct((B, C, N), x.dtype),
        grid_spec=pltpu.PrefetchScalarGridSpec(
            num_scalar_prefetch=0,
            grid=grid,
            in_specs=[
                pl.BlockSpec((bt, N, C), lambda b: (b, 0, 0)),  # x, Bt rows, native layout
                pl.BlockSpec((H, C), lambda b: (0, 0)),         # fc1 weight (resident)
                pl.BlockSpec((C, H), lambda b: (0, 0)),         # fc2 weight (resident)
                pl.BlockSpec(memory_space=pltpu.SMEM),          # conv scalars (4,)
            ],
            out_specs=pl.BlockSpec((bt, C, N), lambda b: (b, 0, 0)),
        ),
        compiler_params=pltpu.CompilerParams(
            # Batch-tile axis is embarrassingly parallel: lets v7x's 2 TCs
            # split the grid; a no-op on single-TC v5e/v6e.
            dimension_semantics=("parallel",)),
    )(x, w_fc1, w_fc2, conv_params)


def reference_jax(x, w_fc1, w_fc2, cp):
    """Pure-JAX mirror of the PyTorch forward, for validation."""
    avg = jnp.mean(jnp.transpose(x, (0, 2, 1)), axis=-1)                  # (B, C)
    h = jax.nn.relu(avg @ w_fc1.T)                                        # (B, H)
    fc = jax.nn.sigmoid(h @ w_fc2.T)[..., None]                           # (B, C, 1)
    conv = jax.nn.sigmoid(cp[2] * jax.nn.relu(cp[0] * x + cp[1]) + cp[3]) # (B, N, C)
    return fc * jnp.transpose(conv, (0, 2, 1))                            # (B, C, N)


if __name__ == "__main__":
    B, N, C = 2, 8, 32
    reduction = 16
    H = C // reduction                 # = 2

    key = jax.random.PRNGKey(0)
    kx, k1, k2, kc = jax.random.split(key, 4)

    x = jax.random.normal(kx, (B, N, C), dtype=jnp.float32)
    # nn.Linear(C, C//r, bias=False) weight: (C//r, C); nn.Linear(C//r, C, bias=False): (C, C//r)
    w_fc1 = jax.random.normal(k1, (H, C), dtype=jnp.float32) * 0.1
    w_fc2 = jax.random.normal(k2, (C, H), dtype=jnp.float32) * 0.1
    # two Conv1d(1,1,k=1): [w1, b1, w2, b2] scalars
    conv_params = jax.random.normal(kc, (4,), dtype=jnp.float32) * 0.5

    out = channel_attention(x, w_fc1, w_fc2, conv_params)
    out = jax.block_until_ready(out)

    ref = reference_jax(x, w_fc1, w_fc2, conv_params)
    assert out.shape == (B, C, N), out.shape
    assert jnp.allclose(out, ref, atol=1e-5, rtol=1e-5), "mismatch vs JAX reference"

    print("KERNEL_OK")
</pallas_src>

<mosaic_0001>
module attributes {stable_mosaic.version = 11 : i64} {
  func.func @channel_attention_kernel(%arg0: i32, %arg1: memref<2x8x32xf32, #tpu.memory_space<vmem>>, %arg2: memref<2x32xf32, #tpu.memory_space<vmem>>, %arg3: memref<32x2xf32, #tpu.memory_space<vmem>>, %arg4: memref<4xf32, #tpu.memory_space<smem>>, %arg5: memref<2x32x8xf32, #tpu.memory_space<vmem>>) attributes {dimension_semantics = [#tpu.dimension_semantics<parallel>], iteration_bounds = array<i64: 1>, scalar_prefetch = 0 : i64, scratch_operands = 0 : i64, tpu.core_type = #tpu.core_type<tc>, window_params = [{transform_indices = @transform_0, window_bounds = array<i64: 2, 8, 32>}, {pipeline_mode = #tpu.pipeline_mode<synchronous>, transform_indices = @transform_1, window_bounds = array<i64: 2, 32>}, {pipeline_mode = #tpu.pipeline_mode<synchronous>, transform_indices = @transform_2, window_bounds = array<i64: 32, 2>}, {transform_indices = @transform_3, window_bounds = array<i64: 4>}, {transform_indices = @transform_4, window_bounds = array<i64: 2, 32, 8>}]} {
    %c0 = arith.constant 0 : index
    %0 = memref.load %arg4[%c0] : memref<4xf32, #tpu.memory_space<smem>>
    %c1 = arith.constant 1 : index
    %1 = memref.load %arg4[%c1] : memref<4xf32, #tpu.memory_space<smem>>
    %c2 = arith.constant 2 : index
    %2 = memref.load %arg4[%c2] : memref<4xf32, #tpu.memory_space<smem>>
    %c3 = arith.constant 3 : index
    %3 = memref.load %arg4[%c3] : memref<4xf32, #tpu.memory_space<smem>>
    %c0_0 = arith.constant 0 : index
    %c0_1 = arith.constant 0 : index
    %c0_2 = arith.constant 0 : index
    %4 = vector.load %arg1[%c0_0, %c0_1, %c0_2] : memref<2x8x32xf32, #tpu.memory_space<vmem>>, vector<2x8x32xf32>
    %cst = arith.constant dense<0.000000e+00> : vector<2x32xf32>
    %5 = vector.multi_reduction <add>, %4, %cst [1] : vector<2x8x32xf32> to vector<2x32xf32>
    %cst_3 = arith.constant 8.000000e+00 : f32
    %6 = vector.broadcast %cst_3 : f32 to vector<2x32xf32>
    %7 = arith.divf %5, %6 : vector<2x32xf32>
    %c0_4 = arith.constant 0 : index
    %c0_5 = arith.constant 0 : index
    %8 = vector.load %arg2[%c0_4, %c0_5] : memref<2x32xf32, #tpu.memory_space<vmem>>, vector<2x32xf32>
    %cst_6 = arith.constant dense<0.000000e+00> : vector<2x2xf32>
    %9 = tpu.matmul %7, %8, %cst_6 {dimension_numbers = #tpu.dot_dimension_numbers<[1], [1], [0], [0], [0, 0, 1, 0], [], []>} : vector<2x32xf32>, vector<2x32xf32>, vector<2x2xf32> -> vector<2x2xf32>
    %cst_7 = arith.constant 0.000000e+00 : f32
    %10 = vector.broadcast %cst_7 : f32 to vector<2x2xf32>
    %11 = arith.maximumf %9, %10 : vector<2x2xf32>
    %c0_8 = arith.constant 0 : index
    %c0_9 = arith.constant 0 : index
    %12 = vector.load %arg3[%c0_8, %c0_9] : memref<32x2xf32, #tpu.memory_space<vmem>>, vector<32x2xf32>
    %cst_10 = arith.constant dense<0.000000e+00> : vector<2x32xf32>
    %13 = tpu.matmul %11, %12, %cst_10 {dimension_numbers = #tpu.dot_dimension_numbers<[1], [1], [0], [0], [0, 0, 1, 0], [], []>} : vector<2x2xf32>, vector<32x2xf32>, vector<2x32xf32> -> vector<2x32xf32>
    %14 = arith.negf %13 : vector<2x32xf32>
    %15 = math.exp %14 : vector<2x32xf32>
    %cst_11 = arith.constant 1.000000e+00 : f32
    %16 = vector.broadcast %cst_11 : f32 to vector<2x32xf32>
    %17 = arith.addf %16, %15 : vector<2x32xf32>
    %18 = arith.divf %16, %17 : vector<2x32xf32>
    %19 = vector.broadcast %0 : f32 to vector<2x8x32xf32>
    %20 = arith.mulf %19, %4 : vector<2x8x32xf32>
    %21 = vector.broadcast %1 : f32 to vector<2x8x32xf32>
    %22 = arith.addf %20, %21 : vector<2x8x32xf32>
    %cst_12 = arith.constant 0.000000e+00 : f32
    %23 = vector.broadcast %cst_12 : f32 to vector<2x8x32xf32>
    %24 = arith.maximumf %22, %23 : vector<2x8x32xf32>
    %25 = vector.broadcast %2 : f32 to vector<2x8x32xf32>
    %26 = arith.mulf %25, %24 : vector<2x8x32xf32>
    %27 = vector.broadcast %3 : f32 to vector<2x8x32xf32>
    %28 = arith.addf %26, %27 : vector<2x8x32xf32>
    %29 = arith.negf %28 : vector<2x8x32xf32>
    %30 = math.exp %29 : vector<2x8x32xf32>
    %cst_13 = arith.constant 1.000000e+00 : f32
    %31 = vector.broadcast %cst_13 : f32 to vector<2x8x32xf32>
    %32 = arith.addf %31, %30 : vector<2x8x32xf32>
    %33 = arith.divf %31, %32 : vector<2x8x32xf32>
    %34 = vector.shape_cast %18 : vector<2x32xf32> to vector<2x1x32xf32>
    %35 = vector.broadcast %34 : vector<2x1x32xf32> to vector<2x8x32xf32>
    %36 = arith.mulf %35, %33 : vector<2x8x32xf32>
    %37 = tpu.transpose %36, [0, 2, 1] : vector<2x8x32xf32> -> vector<2x32x8xf32>
    %c0_14 = arith.constant 0 : index
    %c0_15 = arith.constant 0 : index
    %c0_16 = arith.constant 0 : index
    %38 = vector.load %arg5[%c0_14, %c0_15, %c0_16] : memref<2x32x8xf32, #tpu.memory_space<vmem>>, vector<2x32x8xf32>
    tpu.vector_store %arg5[%c0_14, %c0_15, %c0_16], %37 {strides = array<i32>} : memref<2x32x8xf32, #tpu.memory_space<vmem>>, vector<2x32x8xf32>,
    return
  }
  func.func @transform_0(%arg0: i32) -> (i32, i32, i32) {
    %c0_i32 = arith.constant 0 : i32
    %c0_i32_0 = arith.constant 0 : i32
    %c0_i32_1 = arith.constant 0 : i32
    return %arg0, %c0_i32, %c0_i32_0 : i32, i32, i32
  }
  func.func @transform_1(%arg0: i32) -> (i32, i32) {
    %c0_i32 = arith.constant 0 : i32
    %c0_i32_0 = arith.constant 0 : i32
    %c0_i32_1 = arith.constant 0 : i32
    return %c0_i32, %c0_i32_0 : i32, i32
  }
  func.func @transform_2(%arg0: i32) -> (i32, i32) {
    %c0_i32 = arith.constant 0 : i32
    %c0_i32_0 = arith.constant 0 : i32
    %c0_i32_1 = arith.constant 0 : i32
    return %c0_i32, %c0_i32_0 : i32, i32
  }
  func.func @transform_3(%arg0: i32) -> i32 {
    %c0_i32 = arith.constant 0 : i32
    %c0_i32_0 = arith.constant 0 : i32
    return %c0_i32 : i32
  }
  func.func @transform_4(%arg0: i32) -> (i32, i32, i32) {
    %c0_i32 = arith.constant 0 : i32
    %c0_i32_0 = arith.constant 0 : i32
    %c0_i32_1 = arith.constant 0 : i32
    return %arg0, %c0_i32, %c0_i32_0 : i32, i32, i32
  }
}

</mosaic_0001>

<bundles_post_ra>
// kernel: tpu_custom_call.1
= control target key start
LH: loop header
LB: loop body
LE: loop exit
PB: predicated region body
PF: predicated region fallthrough
CT: control target
= control target key end

     0   :  { %9 = vsyncpa [#allocation3], 0  ;;  %s332_s18 = smov [#allocation2]   ;;  %s430_s0 = inlined_call_operand.vmem [shape: f32[2,8,32], index: 0, kind: input, shape index: {}]   ;;  %s431_s1 = inlined_call_operand.vmem [shape: f32[2,32], index: 1, kind: input, shape index: {}]   ;;  %s432_s2 = inlined_call_operand.vmem [shape: f32[32,2], index: 2, kind: input, shape index: {}]   ;;  %s433_s3 = inlined_call_operand.vmem [shape: f32[4], index: 3, kind: input, shape index: {}]   ;;  %s434_s4 = inlined_call_operand.vmem [shape: f32[2,32,8], index: 4, kind: output, shape index: {}]  }
   0x1   :  { %s21_s17 = sshll.u32 %s433_s3, 4  ;;  %s22_s17 = int_to_ptr.vmem [resolvable:$true] %s21_s17 }
   0x2   :  { %24 = dma.vmem_to_smem %s22_s17, 16, %s332_s18, [#allocation3]  }
   0x3   :  { %330 = dma.done.wait [#allocation3], 16  }
   0x4   :  { %331 = vsyncadd [#allocation3], 4294967280 }
   0x5   :  { %29 = sfence }
   0x6   :  { %v34_v0 = vld [vmem:[%s430_s0] sm:$0xff]  ;;  %v35_v1 = vld [vmem:[%s430_s0 + $0x8] sm:$0xff]  ;;  %vm36_vm0 = vcmask 261120   ;;  %v333_v5 = vmov 8.0   ;;  %v94_v8 = vld [vmem:[%s432_s2 + $0x18] sm:$0xff]  ;;  %vm95_vm1 = vcmask 15360  }
   0x7   :  { %v37_v2 = vsel %vm36_vm0, %v34_v0, 0.0  ;;  %v44_v3 = vsel %vm36_vm0, %v35_v1, 0.0  ;;  %v60_v4 = vld [vmem:[%s431_s1] sm:$0x3]  ;;  %304 = vrcp.f32 %v333_v5  ;;  %293 = vmatpush.xpose.msk.msra.mxu1 %vm95_vm1, %v94_v8  ;;  %v93_v11 = vld [vmem:[%s432_s2 + $0x10] sm:$0xff]  ;;  %v92_v18 = vld [vmem:[%s432_s2 + $0x8] sm:$0xff] }
   0x8   :  { %v38_v6 = vrot.slane %v37_v2, 4  ;;  %v45_v7 = vrot.slane %v44_v3, 4  ;;  %291 = vmatpush.xpose.msk.msra.mxu0 %vm36_vm0, %v60_v4  ;;  %vm63_vm3 = vcmask 1041409   ;;  %v91_v30 = vld [vmem:[%s432_s2] sm:$0xff]  ;;  %s30_s30 = sld [smem:[#allocation2]] }
   0x9   :  { %s288_s5 = sld [smem:[#allocation2 + $0x1]] }
   0xa   :  { %v39_v9 = vadd.f32 %v38_v6, %v37_v2  ;;  %v46_v10 = vadd.f32 %v45_v7, %v44_v3  ;;  %s289_s6 = sld [smem:[#allocation2 + $0x2]] }
   0xb   :  { %294 = vmatpush.xpose.msk.msra.mxu1 %vm95_vm1, %v93_v11  ;;  %s290_s7 = sld [smem:[#allocation2 + $0x3]] }
   0xc   :  { %v40_v12 = vrot.slane %v39_v9, 2  ;;  %v47_v13 = vrot.slane %v46_v10, 2 }
   0xd   :  { %v305_v14 = vpop.eup %304 }
   0xe   :  { %v41_v15 = vadd.f32 %v40_v12, %v39_v9  ;;  %v48_v16 = vadd.f32 %v47_v13, %v46_v10  ;;  %v52_v17 = vmul.f32 8.0, %v305_v14  ;;  %vm56_vm2 = vweird.f32 %v305_v14 }
   0xf   :  { %295 = vmatpush.xpose.msk.msra.mxu1 %vm95_vm1, %v92_v18  ;;  %v150_v33 = vstv %s30_s30  ;;  %v153_v35 = vstv %s288_s5 }
  0x10   :  { %v42_v19 = vrot.slane %v41_v15, 1  ;;  %v49_v20 = vrot.slane %v48_v16, 1  ;;  %v53_v21 = vsub.f32 1.0, %v52_v17  ;;  %v151_v34 = vmul.f32 %v150_v33, %v34_v0 }
  0x11   :  { %v158_v38 = vstv %s289_s6  ;;  %v161_v40 = vstv %s290_s7  ;;  %v152_v44 = vmul.f32 %v150_v33, %v35_v1 }
  0x12   :  { %v54_v22 = vmul.f32 %v305_v14, %v53_v21  ;;  %v43_v23 = vadd.f32 %v42_v19, %v41_v15  ;;  %v50_v24 = vadd.f32 %v49_v20, %v48_v16  ;;  %v154_v36 = vadd.f32 %v153_v35, %v151_v34 }
  0x13   :  { %296 = vmatpush.xpose.msk.msra.mxu1 %vm95_vm1, %v91_v30  ;;  %v155_v46 = vadd.f32 %v153_v35, %v152_v44 }
  0x14   :  { %v55_v25 = vadd.f32 %v305_v14, %v54_v22  ;;  %v156_v37 = vmax.f32 %v154_v36, 0.0 }
  0x15   :  { %v157_v49 = vmax.f32 %v155_v46, 0.0 }
  0x16   :  { %v57_v26 = vsel %vm56_vm2, %v305_v14, %v55_v25  ;;  %v159_v39 = vmul.f32 %v158_v38, %v156_v37 }
  0x17   :  { %v58_v27 = vmul.f32 %v57_v26, %v43_v23  ;;  %v59_v28 = vmul.f32 %v57_v26, %v50_v24  ;;  %v160_v51 = vmul.f32 %v158_v38, %v157_v49 }
  0x18   :  { %v162_v41 = vadd.f32 %v161_v40, %v159_v39 }
  0x19   :  { %v64_v29 = vsel %vm63_vm3, %v59_v28, %v58_v27  ;;  %v163_v55 = vadd.f32 %v161_v40, %v160_v51 }
  0x1a   :  { %292 = vmatmul.msk.f32.vlgmr.msra.gmra.mxu0 %vm36_vm0, %v64_v29  ;;  %v299_v42 = vmul.f32 -1.442695, %v162_v41  ;;  %vm274_vm0 = vcmask 64512  }
  0x1b   :  { %v300_v57 = vmul.f32 -1.442695, %v163_v55 }
  0x1c   :  { %306 = vpow2.f32 %v299_v42 }
  0x22   :  { %v307_v43 = vpop.eup %306 }
  0x23   :  { %v170_v45 = vadd.f32 1.0, %v307_v43 }
  0x25   :  { %308 = vrcp.f32 %v170_v45  ;;  %vm177_vm4 = vweird.f32 %v170_v45  ;;  %v183_v61 = vand.u32 2147483648, %v170_v45  ;;  %v181_v0 = vand.u32 2147483647, %v170_v45 }
  0x27   :  { %v184_v5 = vor.u32 1.1754944e-38, %v183_v61  ;;  %vm182_vm9 = vcmp.eq.f32.partialorder %v181_v0, 8.507059e+37 }
  0x2b   :  { %v309_v50 = vpop.eup %308 }
  0x2c   :  { %v173_v53 = vmul.f32 %v309_v50, %v170_v45  ;;  %vm178_vm5 = vweird.f32 %v309_v50 }
  0x2d   :  { %vm392_vm6 = vmor %vm177_vm4, %vm178_vm5 }
  0x2e   :  { %v174_v56 = vsub.f32 1.0, %v173_v53 }
  0x30   :  { %v175_v58 = vmul.f32 %v309_v50, %v174_v56 }
  0x32   :  { %v176_v63 = vadd.f32 %v309_v50, %v175_v58 }
  0x34   :  { %v180_v8 = vsel %vm392_vm6, %v309_v50, %v176_v63 }
  0x35   :  { %v185_v12 = vsel %vm182_vm9, %v184_v5, %v180_v8 }
  0x97   :  { %v87_v31 = vpop.f32.mrf.mxu0 }
  0x98   :  { %v90_v32 = vmax.f32 %v87_v31, 0.0 }
  0x9a   :  { %297 = vmatmul.msk.f32.vlgmr.msra.gmra.mxu1 %vm95_vm1, %v90_v32 }
 0x117   :  { %v128_v47 = vpop.f32.mrf.mxu1 }
 0x118   :  { %v298_v48 = vmul.f32 -1.442695, %v128_v47 }
 0x11a   :  { %310 = vpow2.f32 %v298_v48 }
 0x120   :  { %v311_v52 = vpop.eup %310 }
 0x121   :  { %v134_v54 = vadd.f32 1.0, %v311_v52 }
 0x123   :  { %312 = vrcp.f32 %v134_v54  ;;  %v146_v1 = vand.u32 2147483648, %v134_v54  ;;  %v144_v4 = vand.u32 2147483647, %v134_v54  ;;  %vm140_vm8 = vweird.f32 %v134_v54 }
 0x124   :  { %314 = vpow2.f32 %v300_v57 }
 0x125   :  { %v147_v9 = vor.u32 1.1754944e-38, %v146_v1  ;;  %vm145_vm11 = vcmp.eq.f32.partialorder %v144_v4, 8.507059e+37 }
 0x129   :  { %v313_v59 = vpop.eup %312 }
 0x12a   :  { %v136_v60 = vmul.f32 %v313_v59, %v134_v54  ;;  %vm141_vm7 = vweird.f32 %v313_v59  ;;  %v315_v6 = vpop.eup %314 }
 0x12b   :  { %vm142_vm10 = vmor %vm140_vm8, %vm141_vm7  ;;  %v171_v13 = vadd.f32 1.0, %v315_v6 }
 0x12c   :  { %v137_v62 = vsub.f32 1.0, %v136_v60 }
 0x12d   :  { %316 = vrcp.f32 %v171_v13  ;;  %vm192_vm12 = vweird.f32 %v171_v13  ;;  %v198_v20 = vand.u32 2147483648, %v171_v13  ;;  %v196_v22 = vand.u32 2147483647, %v171_v13 }
 0x12e   :  { %v138_v3 = vmul.f32 %v313_v59, %v137_v62 }
 0x12f   :  { %v199_v24 = vor.u32 1.1754944e-38, %v198_v20  ;;  %vm197_vm15 = vcmp.eq.f32.partialorder %v196_v22, 8.507059e+37 }
 0x130   :  { %v139_v7 = vadd.f32 %v313_v59, %v138_v3 }
 0x132   :  { %v143_v10 = vsel %vm142_vm10, %v313_v59, %v139_v7 }
 0x133   :  { %v148_v11 = vsel %vm145_vm11, %v147_v9, %v143_v10  ;;  %v317_v16 = vpop.eup %316 }
 0x134   :  { %v204_v14 = vperm.slane %v148_v11, 0  ;;  %v188_v17 = vmul.f32 %v317_v16, %v171_v13  ;;  %vm193_vm13 = vweird.f32 %v317_v16  ;;  %v203_v23 = vrot.slane %v148_v11, 1 }
 0x135   :  { %vm194_vm14 = vmor %vm192_vm12, %vm193_vm13 }
 0x136   :  { %v208_v15 = vmul.f32 %v204_v14, %v185_v12  ;;  %v189_v18 = vsub.f32 1.0, %v188_v17  ;;  %v205_v26 = vperm.slane %v203_v23, 0 }
 0x138   :  { %210 = vxpose.xlu0.b32.start.end [1/1] (short) (narrow) %v208_v15, 32  ;;  %v190_v19 = vmul.f32 %v317_v16, %v189_v18 }
 0x13a   :  { %v191_v21 = vadd.f32 %v317_v16, %v190_v19 }
 0x13c   :  { %v195_v25 = vsel %vm194_vm14, %v317_v16, %v191_v21 }
 0x13d   :  { %v200_v27 = vsel %vm197_vm15, %v199_v24, %v195_v25 }
 0x13e   :  { %v209_v28 = vmul.f32 %v205_v26, %v200_v27 }
 0x158   :  { %242 = vxpose.xlu0.b32.start.end [1/1] (short) (narrow) %v209_v28, 32 }
 0x1dc   :  { %v226_v29 = vpop.trf.xlu0 }
 0x1dd   :  { %275 = vst.msk [vmem:[%s434_s4] sm:$0xff] %vm274_vm0, %v226_v29 }
 0x1e4   :  { %v227_v30 = vpop.trf.xlu0 }
 0x1e5   :  { %276 = vst.msk [vmem:[%s434_s4 + $0x8] sm:$0xff] %vm274_vm0, %v227_v30 }
 0x1ec   :  { %v228_v31 = vpop.trf.xlu0 }
 0x1ed   :  { %277 = vst.msk [vmem:[%s434_s4 + $0x10] sm:$0xff] %vm274_vm0, %v228_v31 }
 0x1f4   :  { %v229_v32 = vpop.trf.xlu0 }
 0x1f5   :  { %278 = vst.msk [vmem:[%s434_s4 + $0x18] sm:$0xff] %vm274_vm0, %v229_v32 }
 0x1fc   :  { %v258_v33 = vpop.trf.xlu0 }
 0x1fd   :  { %279 = vst.msk [vmem:[%s434_s4 + $0x20] sm:$0xff] %vm274_vm0, %v258_v33 }
 0x204   :  { %v259_v34 = vpop.trf.xlu0 }
 0x205   :  { %280 = vst.msk [vmem:[%s434_s4 + $0x28] sm:$0xff] %vm274_vm0, %v259_v34 }
 0x20c   :  { %v260_v35 = vpop.trf.xlu0 }
 0x20d   :  { %281 = vst.msk [vmem:[%s434_s4 + $0x30] sm:$0xff] %vm274_vm0, %v260_v35 }
 0x214   :  { %v261_v36 = vpop.trf.xlu0 }
 0x215   :  { %282 = vst.msk [vmem:[%s434_s4 + $0x38] sm:$0xff] %vm274_vm0, %v261_v36 }
 0x216   :  { %287 = vsyncpa [#allocation3], 1 }

</bundles_post_ra>
